<compile_context>
chip_gen: v7x
topology: tpu7x:2x2x1
jax: 0.10.0
libtpu: 0.0.40
codegen_flags: <defaults>
</compile_context>

<pallas_src>
import functools
import math

import jax
import jax.numpy as jnp
from jax.experimental import pallas as pl
from jax.experimental.pallas import tpu as pltpu


def _affinity_kernel(a_ref, b_ref, w_out_ref, adj_out_ref, *, log_threshold, bt):
    """One grid step = Bt point clouds, all n_w weights fused into one lane-dense slab.

    a_ref       : (Bt, N, K_pad)       augmented LHS   [pc, pc^2, 1, pad]
    b_ref       : (Bt, K_pad, n_w*N)   augmented RHS   (scale factors / diag folded in)
    w_out_ref   : (Bt, N, n_w*N)       float32 slab    W = exp(-dist/sigma)
    adj_out_ref : (Bt, N, n_w*N)       int8 slab       adjacency = (W >= threshold)
    """
    for t in range(bt):  # Bt is tiny & static -> fully unrolled
        # Single MXU matmul produces arg[i, w*N + j] = -dist_w(i, j) / sigma directly.
        arg = jnp.dot(a_ref[t], b_ref[t], preferred_element_type=jnp.float32)
        # Log-domain threshold: compare does NOT depend on the exp result (overlaps EUP).
        adj_out_ref[t] = (arg >= log_threshold).astype(jnp.int8)
        w_out_ref[t] = jnp.exp(arg)


def simplicial_affinity(point_clouds, alphas, sigma, *, threshold, bt=None):
    """Dense hot path of SimplicialFeatLearningLayerTri.forward.

    point_clouds: (B, N, D) float32
    alphas      : (n_weights, D) float32  (nn.Parameter)
    sigma       : python float

    Returns (W, X_nodes, adjacency):
      W        : (B, n_weights, N, N) float32  exp(-dist/sigma)
      X_nodes  : (B, n_weights, N, D) float32  scaled point clouds
      adjacency: (B, n_weights, N, N) int8     (W >= threshold)
    """
    B, N, D = point_clouds.shape
    n_w = alphas.shape[0]
    sigma = float(sigma)
    inv_sigma = 1.0 / sigma
    # exp is monotone: W >= t  <=>  arg >= log(t).
    log_threshold = math.log(threshold) if threshold > 0.0 else float("-inf")

    # Block several point clouds per grid step to amortize per-step overhead.
    if bt is None:
        bt = 1
        for cand in (8, 4, 2, 1):
            if B % cand == 0:
                bt = cand
                break
    assert B % bt == 0

    # ---- Tiny augmented-operand construction (KB-scale, plain XLA) ---------------------
    dt = point_clouds.dtype
    alphas2 = alphas * alphas                                     # (n_w, D)
    pc2 = point_clouds * point_clouds                             # (B, N, D)
    diag = jnp.einsum("bnd,wd->bwn", pc2, alphas2)                # (B, n_w, N)

    K = 2 * D + 1
    K_pad = -(-K // 8) * 8                                        # sublane-aligned contraction

    a_aug = jnp.concatenate(
        [point_clouds, pc2, jnp.ones((B, N, 1), dtype=dt)], axis=-1)           # (B, N, K)
    a_aug = jnp.pad(a_aug, ((0, 0), (0, 0), (0, K_pad - K)))                    # (B, N, K_pad)

    b_top = (2.0 * inv_sigma) * point_clouds[:, None, :, :] * alphas2[None, :, None, :]
    b_mid = jnp.broadcast_to((-inv_sigma) * alphas2[None, :, None, :], (B, n_w, N, D))
    b_dia = (-inv_sigma) * diag[..., None]                                       # (B, n_w, N, 1)
    b_aug = jnp.concatenate([b_top, b_mid, b_dia], axis=-1)                      # (B, n_w, N, K)
    b_aug = jnp.pad(b_aug, ((0, 0), (0, 0), (0, 0), (0, K_pad - K)))
    b_aug = b_aug.reshape(B, n_w * N, K_pad).transpose(0, 2, 1)                  # (B, K_pad, n_w*N)

    # ---- Pallas call --------------------------------------------------------------------
    kernel = functools.partial(_affinity_kernel, log_threshold=log_threshold, bt=bt)

    grid_spec = pltpu.PrefetchScalarGridSpec(
        num_scalar_prefetch=0,
        grid=(B // bt,),
        in_specs=[
            pl.BlockSpec((bt, N, K_pad), lambda g: (g, 0, 0)),
            pl.BlockSpec((bt, K_pad, n_w * N), lambda g: (g, 0, 0)),
        ],
        out_specs=[
            pl.BlockSpec((bt, N, n_w * N), lambda g: (g, 0, 0)),   # W slab (f32)
            pl.BlockSpec((bt, N, n_w * N), lambda g: (g, 0, 0)),   # adjacency slab (int8)
        ],
    )

    out_shapes = (
        jax.ShapeDtypeStruct((B, N, n_w * N), jnp.float32),
        jax.ShapeDtypeStruct((B, N, n_w * N), jnp.int8),
    )

    w_slab, adj_slab = pl.pallas_call(
        kernel,
        out_shape=out_shapes,
        grid_spec=grid_spec,
        compiler_params=pltpu.CompilerParams(dimension_semantics=("parallel",)),
    )(a_aug, b_aug)

    # Wrapper-side layout plumbing: slab[b, i, w*N + j] -> (B, n_w, N, N).
    W = w_slab.reshape(B, N, n_w, N).transpose(0, 2, 1, 3)
    adjacency = adj_slab.reshape(B, N, n_w, N).transpose(0, 2, 1, 3)

    # X_nodes is a trivial fused broadcast-mul; its D=8 lane width would waste an output
    # pipeline inside the kernel.
    X_nodes = point_clouds[:, None, :, :] * alphas[None, :, None, :]

    return W, X_nodes, adjacency


def _reference(point_clouds, alphas, sigma, threshold):
    """Pure-JAX reference of the same hot path, for validation."""
    def per_pair(pc, alpha):
        x = pc * alpha[None, :]
        g = x @ x.T
        d = jnp.diag(g)[None, :] + jnp.diag(g)[:, None] - 2.0 * g
        w = jnp.exp(-d / sigma)
        return w, x, (w >= threshold).astype(jnp.int8)

    f = jax.vmap(jax.vmap(per_pair, in_axes=(None, 0)), in_axes=(0, None))
    return f(point_clouds, alphas)


if __name__ == "__main__":
    # Small shapes consistent with the module: batch of 2 point clouds, 32 points each,
    # feature dimension 8, n_weights = 4 (so the fused slab is a lane-dense 32 x 128).
    B, N, D = 2, 32, 8
    n_weights = 4
    sigma = 1.5
    threshold = 0.5

    key = jax.random.PRNGKey(0)
    k_pc, k_alpha = jax.random.split(key)
    point_clouds = jax.random.normal(k_pc, (B, N, D), dtype=jnp.float32)
    # nn.Parameter(torch.rand((n_weights, dimension))) -> uniform [0, 1)
    alphas = jax.random.uniform(k_alpha, (n_weights, D), dtype=jnp.float32)

    W, X_nodes, adj = simplicial_affinity(point_clouds, alphas, sigma,
                                          threshold=threshold)
    jax.block_until_ready((W, X_nodes, adj))

    W_ref, X_ref, adj_ref = _reference(point_clouds, alphas, sigma, threshold)
    assert jnp.allclose(W, W_ref, atol=1e-4, rtol=1e-4)
    assert jnp.allclose(X_nodes, X_ref, atol=1e-5, rtol=1e-5)
    # Tolerance-aware adjacency check: only require agreement away from the exact threshold
    # (log-domain compare and fp accumulation-order differences can flip borderline entries).
    non_border = jnp.abs(W_ref - threshold) > 1e-4
    assert jnp.all((adj == adj_ref) | (~non_border))

    # TODO(synk): downstream ragged graph construction (torch.where edge lists, Python-set
    # triangle enumeration, frozenset edge/triangle pair indices, torch.unique) and the
    # undefined GraphWaveletTransform are host-side / dynamically shaped and have no clean
    # Pallas equivalent; they would consume W / adj / X_nodes produced above.

    print("KERNEL_OK")
</pallas_src>

<mosaic_0001>
module attributes {stable_mosaic.version = 11 : i64} {
  func.func @_affinity_kernel(%arg0: i32, %arg1: memref<2x32x24xf32, #tpu.memory_space<vmem>>, %arg2: memref<2x24x128xf32, #tpu.memory_space<vmem>>, %arg3: memref<2x32x128xf32, #tpu.memory_space<vmem>>, %arg4: memref<2x32x128xi8, #tpu.memory_space<vmem>>) attributes {dimension_semantics = [#tpu.dimension_semantics<parallel>], iteration_bounds = array<i64: 1>, scalar_prefetch = 0 : i64, scratch_operands = 0 : i64, tpu.core_type = #tpu.core_type<tc>, window_params = [{transform_indices = @transform_0, window_bounds = array<i64: 2, 32, 24>}, {transform_indices = @transform_1, window_bounds = array<i64: 2, 24, 128>}, {transform_indices = @transform_2, window_bounds = array<i64: 2, 32, 128>}, {transform_indices = @transform_3, window_bounds = array<i64: 2, 32, 128>}]} {
    %c0 = arith.constant 0 : index
    %c0_0 = arith.constant 0 : index
    %c0_1 = arith.constant 0 : index
    %0 = vector.load %arg1[%c0, %c0_0, %c0_1] : memref<2x32x24xf32, #tpu.memory_space<vmem>>, vector<1x32x24xf32>
    %1 = vector.shape_cast %0 : vector<1x32x24xf32> to vector<32x24xf32>
    %c0_2 = arith.constant 0 : index
    %c0_3 = arith.constant 0 : index
    %c0_4 = arith.constant 0 : index
    %2 = vector.load %arg2[%c0_2, %c0_3, %c0_4] : memref<2x24x128xf32, #tpu.memory_space<vmem>>, vector<1x24x128xf32>
    %3 = vector.shape_cast %2 : vector<1x24x128xf32> to vector<24x128xf32>
    %cst = arith.constant dense<0.000000e+00> : vector<32x128xf32>
    %4 = tpu.matmul %1, %3, %cst {dimension_numbers = #tpu.dot_dimension_numbers<[1], [0], [0], [1], [0, 0, 1, 1], [], []>} : vector<32x24xf32>, vector<24x128xf32>, vector<32x128xf32> -> vector<32x128xf32>
    %cst_5 = arith.constant -0.693147182 : f32
    %5 = vector.broadcast %cst_5 : f32 to vector<32x128xf32>
    %6 = arith.cmpf oge, %4, %5 : vector<32x128xf32>
    %7 = arith.extui %6 : vector<32x128xi1> to vector<32x128xi8>
    %c0_6 = arith.constant 0 : index
    %c0_7 = arith.constant 0 : index
    %c0_8 = arith.constant 0 : index
    %8 = vector.load %arg4[%c0_6, %c0_7, %c0_8] : memref<2x32x128xi8, #tpu.memory_space<vmem>>, vector<1x32x128xi8>
    %9 = vector.shape_cast %8 : vector<1x32x128xi8> to vector<32x128xi8>
    %10 = vector.shape_cast %7 : vector<32x128xi8> to vector<1x32x128xi8>
    tpu.vector_store %arg4[%c0_6, %c0_7, %c0_8], %10 {strides = array<i32>} : memref<2x32x128xi8, #tpu.memory_space<vmem>>, vector<1x32x128xi8>,
    %11 = math.exp %4 : vector<32x128xf32>
    %c0_9 = arith.constant 0 : index
    %c0_10 = arith.constant 0 : index
    %c0_11 = arith.constant 0 : index
    %12 = vector.load %arg3[%c0_9, %c0_10, %c0_11] : memref<2x32x128xf32, #tpu.memory_space<vmem>>, vector<1x32x128xf32>
    %13 = vector.shape_cast %12 : vector<1x32x128xf32> to vector<32x128xf32>
    %14 = vector.shape_cast %11 : vector<32x128xf32> to vector<1x32x128xf32>
    tpu.vector_store %arg3[%c0_9, %c0_10, %c0_11], %14 {strides = array<i32>} : memref<2x32x128xf32, #tpu.memory_space<vmem>>, vector<1x32x128xf32>,
    %c1 = arith.constant 1 : index
    %c0_12 = arith.constant 0 : index
    %c0_13 = arith.constant 0 : index
    %15 = vector.load %arg1[%c1, %c0_12, %c0_13] : memref<2x32x24xf32, #tpu.memory_space<vmem>>, vector<1x32x24xf32>
    %16 = vector.shape_cast %15 : vector<1x32x24xf32> to vector<32x24xf32>
    %c1_14 = arith.constant 1 : index
    %c0_15 = arith.constant 0 : index
    %c0_16 = arith.constant 0 : index
    %17 = vector.load %arg2[%c1_14, %c0_15, %c0_16] : memref<2x24x128xf32, #tpu.memory_space<vmem>>, vector<1x24x128xf32>
    %18 = vector.shape_cast %17 : vector<1x24x128xf32> to vector<24x128xf32>
    %cst_17 = arith.constant dense<0.000000e+00> : vector<32x128xf32>
    %19 = tpu.matmul %16, %18, %cst_17 {dimension_numbers = #tpu.dot_dimension_numbers<[1], [0], [0], [1], [0, 0, 1, 1], [], []>} : vector<32x24xf32>, vector<24x128xf32>, vector<32x128xf32> -> vector<32x128xf32>
    %cst_18 = arith.constant -0.693147182 : f32
    %20 = vector.broadcast %cst_18 : f32 to vector<32x128xf32>
    %21 = arith.cmpf oge, %19, %20 : vector<32x128xf32>
    %22 = arith.extui %21 : vector<32x128xi1> to vector<32x128xi8>
    %c1_19 = arith.constant 1 : index
    %c0_20 = arith.constant 0 : index
    %c0_21 = arith.constant 0 : index
    %23 = vector.load %arg4[%c1_19, %c0_20, %c0_21] : memref<2x32x128xi8, #tpu.memory_space<vmem>>, vector<1x32x128xi8>
    %24 = vector.shape_cast %23 : vector<1x32x128xi8> to vector<32x128xi8>
    %25 = vector.shape_cast %22 : vector<32x128xi8> to vector<1x32x128xi8>
    tpu.vector_store %arg4[%c1_19, %c0_20, %c0_21], %25 {strides = array<i32>} : memref<2x32x128xi8, #tpu.memory_space<vmem>>, vector<1x32x128xi8>,
    %26 = math.exp %19 : vector<32x128xf32>
    %c1_22 = arith.constant 1 : index
    %c0_23 = arith.constant 0 : index
    %c0_24 = arith.constant 0 : index
    %27 = vector.load %arg3[%c1_22, %c0_23, %c0_24] : memref<2x32x128xf32, #tpu.memory_space<vmem>>, vector<1x32x128xf32>
    %28 = vector.shape_cast %27 : vector<1x32x128xf32> to vector<32x128xf32>
    %29 = vector.shape_cast %26 : vector<32x128xf32> to vector<1x32x128xf32>
    tpu.vector_store %arg3[%c1_22, %c0_23, %c0_24], %29 {strides = array<i32>} : memref<2x32x128xf32, #tpu.memory_space<vmem>>, vector<1x32x128xf32>,
    return
  }
  func.func @transform_0(%arg0: i32) -> (i32, i32, i32) {
    %c0_i32 = arith.constant 0 : i32
    %c0_i32_0 = arith.constant 0 : i32
    %c0_i32_1 = arith.constant 0 : i32
    return %arg0, %c0_i32, %c0_i32_0 : i32, i32, i32
  }
  func.func @transform_1(%arg0: i32) -> (i32, i32, i32) {
    %c0_i32 = arith.constant 0 : i32
    %c0_i32_0 = arith.constant 0 : i32
    %c0_i32_1 = arith.constant 0 : i32
    return %arg0, %c0_i32, %c0_i32_0 : i32, i32, i32
  }
  func.func @transform_2(%arg0: i32) -> (i32, i32, i32) {
    %c0_i32 = arith.constant 0 : i32
    %c0_i32_0 = arith.constant 0 : i32
    %c0_i32_1 = arith.constant 0 : i32
    return %arg0, %c0_i32, %c0_i32_0 : i32, i32, i32
  }
  func.func @transform_3(%arg0: i32) -> (i32, i32, i32) {
    %c0_i32 = arith.constant 0 : i32
    %c0_i32_0 = arith.constant 0 : i32
    %c0_i32_1 = arith.constant 0 : i32
    return %arg0, %c0_i32, %c0_i32_0 : i32, i32, i32
  }
}

</mosaic_0001>

<bundles_post_ra>
// kernel: tpu_custom_call.1
= control target key start
LH: loop header
LB: loop body
LE: loop exit
PB: predicated region body
PF: predicated region fallthrough
CT: control target
= control target key end

     0   :  { %9 = vsyncpa [#allocation3], 0  ;;  %vm24_vm0 = vcmask 195584   ;;  %s552_s0 = inlined_call_operand.vmem [shape: f32[2,32,24], index: 0, kind: input, shape index: {}]   ;;  %s553_s1 = inlined_call_operand.vmem [shape: f32[2,24,128], index: 1, kind: input, shape index: {}]   ;;  %s554_s2 = inlined_call_operand.hbm [shape: f32[2,32,128], index: 2, kind: output, shape index: {0}]   ;;  %s555_s3 = inlined_call_operand.hbm [shape: s8[2,32,128], index: 3, kind: output, shape index: {1}]  }
   0x1   :  { %v21_v0 = vld [vmem:[%s553_s1] sm:$0xff]  ;;  %v22_v1 = vld [vmem:[%s553_s1 + $0x8] sm:$0xff]  ;;  %v312_v2 = vld [vmem:[%s553_s1 + $0x18] sm:$0xff] }
   0x2   :  { %v357_v3 = vpack.c.bf16 %v22_v1, %v21_v0  ;;  %v313_v4 = vld [vmem:[%s553_s1 + $0x20] sm:$0xff]  ;;  %v23_v6 = vld [vmem:[%s553_s1 + $0x10] sm:$0xff]  ;;  %v314_v8 = vld [vmem:[%s553_s1 + $0x28] sm:$0xff] }
   0x3   :  { %v361_v5 = vpack.c.bf16 %v313_v4, %v312_v2  ;;  %v17_v7 = vld [vmem:[%s552_s0] sm:$0xff] }
   0x4   :  { %358 = vmatprep.subr.bf16.mxu0 %v357_v3  ;;  %339 = vmatprep.mubr.msk.f32.mxu0 %vm24_vm0, %v17_v7  ;;  %v308_v9 = vld [vmem:[%s552_s0 + $0x20] sm:$0xff] }
   0x5   :  { %362 = vmatprep.subr.bf16.mxu1 %v361_v5  ;;  %360 = vmatpush3.bf16.msra.mxu0 %v357_v3 }
   0x6   :  { %10 = vsyncpa [#allocation5], 0  ;;  %364 = vmatpush3.bf16.msra.mxu1 %v361_v5  ;;  %337 = vmatprep.subr.mxu0 %v23_v6  ;;  %v18_v10 = vld [vmem:[%s552_s0 + $0x8] sm:$0xff]  ;;  %v19_v12 = vld [vmem:[%s552_s0 + $0x10] sm:$0xff]  ;;  %v435_v34 = vmov 0  }
   0x7   :  { %349 = vmatprep.subr.mxu1 %v314_v8  ;;  %351 = vmatprep.mubr.msk.f32.mxu1 %vm24_vm0, %v308_v9  ;;  %v309_v11 = vld [vmem:[%s552_s0 + $0x28] sm:$0xff]  ;;  %v310_v13 = vld [vmem:[%s552_s0 + $0x30] sm:$0xff]  ;;  %v20_v14 = vld [vmem:[%s552_s0 + $0x18] sm:$0xff] }
   0x8   :  { %v311_v15 = vld [vmem:[%s552_s0 + $0x38] sm:$0xff]  ;;  %s434_s0 = smov [#allocation4]  }
   0x9   :  { %338 = vmatpush3.msra.mxu0 %v23_v6  ;;  %s289_s12 = sshll.u32 %s434_s0, 4  ;;  %s290_s12 = int_to_ptr.vmem [resolvable:$true] %s289_s12 }
   0xa   :  { %350 = vmatpush3.msra.mxu1 %v314_v8  ;;  %340 = vmatmul.mubr.msk.f32.vlgmr.msra.gmra.mrb[0].mxu0 %vm24_vm0, %v18_v10  ;;  %s386_s13 = scalar_lea.vmem %s290_s12, 256  ;;  %p391_p1 = scmp.lt.s32.totalorder %s290_s12, %s290_s12 }
   0xb   :  { %352 = vmatmul.mubr.msk.f32.vlgmr.msra.gmra.mrb[0].mxu1 %vm24_vm0, %v309_v11  ;;  %342 = vmatprep.mubr.msk.f32.mxu0 %vm24_vm0, %v19_v12  ;;  %p387_p0 = scmp.ne.s32.totalorder %s290_s12, %s386_s13  ;;  %p392_p2 = scmp.lt.s32.totalorder %s386_s13, %s386_s13 }
   0xc   :  { %354 = vmatprep.mubr.msk.f32.mxu1 %vm24_vm0, %v310_v13 }
   0xd   :  { %p393_p3 = por %p392_p2, %p391_p1 }
   0xe   :  { %343 = vmatmul.mubr.msk.f32.gmra.mrb[2].mxu0 %vm24_vm0, %v20_v14 }
   0xf   :  { %355 = vmatmul.mubr.msk.f32.gmra.mrb[2].mxu1 %vm24_vm0, %v311_v15  ;;  %p394_p4 = pnand %p393_p3, %p387_p0 }
  0xdd   :  { %v341_v16 = vpop.f32.mrb[0].mxu0 }
  0xde   :  { %vm123_vm1 = vcmp.ge.f32.partialorder %v341_v16, -0.6931472  ;;  %v133_v17 = vmul.f32 1.442695, %v341_v16  ;;  %v353_v18 = vpop.f32.mrb[0].mxu1  ;;  %v103_v19 = vpop.f32.mrb[1].mxu0 }
  0xdf   :  { %vm250_vm2 = vcmp.ge.f32.partialorder %v353_v18, -0.6931472  ;;  %v261_v20 = vmul.f32 1.442695, %v353_v18  ;;  %vm122_vm3 = vcmp.ge.f32.partialorder %v103_v19, -0.6931472 }
  0xe0   :  { %370 = vpow2.f32 %v133_v17  ;;  %vm509_vm4 = vmpackc.low %vm123_vm1, %vm122_vm3  ;;  %v131_v22 = vmul.f32 1.442695, %v103_v19  ;;  %v230_v23 = vpop.f32.mrb[1].mxu1 }
  0xe1   :  { %372 = vpow2.f32 %v261_v20  ;;  %vm249_vm5 = vcmp.ge.f32.partialorder %v230_v23, -0.6931472  ;;  %v259_v24 = vmul.f32 1.442695, %v230_v23  ;;  %v344_v25 = vpop.f32.mrb[2].mxu0 }
  0xe2   :  { %374 = vpow2.f32 %v131_v22  ;;  %vm513_vm6 = vmpackc.low %vm250_vm2, %vm249_vm5  ;;  %vm125_vm7 = vcmp.ge.f32.partialorder %v344_v25, -0.6931472  ;;  %v137_v27 = vmul.f32 1.442695, %v344_v25  ;;  %v356_v28 = vpop.f32.mrb[2].mxu1  ;;  %v113_v29 = vpop.f32.mrb[3].mxu0 }
  0xe3   :  { %376 = vpow2.f32 %v259_v24  ;;  %vm252_vm8 = vcmp.ge.f32.partialorder %v356_v28, -0.6931472  ;;  %v265_v30 = vmul.f32 1.442695, %v356_v28  ;;  %vm124_vm9 = vcmp.ge.f32.partialorder %v113_v29, -0.6931472 }
  0xe4   :  { %378 = vpow2.f32 %v137_v27  ;;  %vm127_vm10 = vmpackc.low %vm125_vm7, %vm124_vm9  ;;  %v135_v31 = vmul.f32 1.442695, %v113_v29  ;;  %v240_v32 = vpop.f32.mrb[3].mxu1 }
  0xe5   :  { %380 = vpow2.f32 %v265_v30  ;;  %vm128_vm11 = vmpackc.even %vm127_vm10, %vm509_vm4  ;;  %vm251_vm12 = vcmp.ge.f32.partialorder %v240_v32, -0.6931472  ;;  %v263_v33 = vmul.f32 1.442695, %v240_v32 }
  0xe6   :  { %v129_v35 = vsel %vm128_vm11, 16843009, %v435_v34  ;;  %382 = vpow2.f32 %v135_v31  ;;  %vm254_vm13 = vmpackc.low %vm252_vm8, %vm251_vm12 }
  0xe7   :  { %130 = vst [vmem:[#allocation4] sm:$0xff] %v129_v35  ;;  %vm255_vm14 = vmpackc.even %vm254_vm13, %vm513_vm6  ;;  %384 = vpow2.f32 %v263_v33 }
  0xe8   :  { %v256_v36 = vsel %vm255_vm14, 16843009, %v435_v34 }
  0xe9   :  { %258 = vst [vmem:[#allocation4 + $0x8] sm:$0xff] %v256_v36 }
  0xea   :  { %v371_v37 = vpop.eup %370 }
  0xeb   :  { %397 = shalt.err (!%p394_p4)
}
  0xec   :  { %s398_s16 = scalar_lea.hbm %s555_s3, 256 }
  0xed   :  { %p399_p5 = scmp.ne.s32.totalorder %s555_s3, %s398_s16  ;;  %p402_p6 = scmp.lt.u32.totalorder %s398_s16, %s555_s3 }
  0xef   :  { %p404_p7 = pnand %p402_p6, %p399_p5 }
  0xf1   :  { %407 = shalt.err (!%p404_p7)
}
  0xf2   :  { %s436_s21 = smov 128   ;;  %s437_s22 = smov 8   ;;  %v373_v38 = vpop.eup %372  ;;  %140 = vst [vmem:[#allocation2 + $0x8] sm:$0xff] %v371_v37 }
  0xf3   :  { %295 = dma.vmem_to_hbm [thread:$0]  %s290_s12, 256, %s555_s3, [#allocation5], %s436_s21, %s436_s21, %s437_s22   ;;  %v375_v39 = vpop.eup %374  ;;  %269 = vst [vmem:[#allocation2 + $0x28] sm:$0xff] %v373_v38 }
  0xf4   :  { %v377_v40 = vpop.eup %376  ;;  %139 = vst [vmem:[#allocation2] sm:$0xff] %v375_v39  ;;  %s438_s25 = smov [#allocation2]  }
  0xf5   :  { %s277_s26 = sshll.u32 %s438_s25, 4  ;;  %v379_v41 = vpop.eup %378  ;;  %268 = vst [vmem:[#allocation2 + $0x20] sm:$0xff] %v377_v40  ;;  %s278_s26 = int_to_ptr.vmem [resolvable:$true] %s277_s26 }
  0xf6   :  { %v381_v42 = vpop.eup %380  ;;  %142 = vst [vmem:[#allocation2 + $0x18] sm:$0xff] %v379_v41  ;;  %s408_s27 = scalar_lea.vmem %s278_s26, 1024  ;;  %p413_p9 = scmp.lt.s32.totalorder %s278_s26, %s278_s26 }
  0xf7   :  { %v383_v43 = vpop.eup %382  ;;  %271 = vst [vmem:[#allocation2 + $0x38] sm:$0xff] %v381_v42  ;;  %p409_p8 = scmp.ne.s32.totalorder %s278_s26, %s408_s27  ;;  %p414_p10 = scmp.lt.s32.totalorder %s408_s27, %s408_s27 }
  0xf8   :  { %v385_v44 = vpop.eup %384  ;;  %141 = vst [vmem:[#allocation2 + $0x10] sm:$0xff] %v383_v43 }
  0xf9   :  { %270 = vst [vmem:[#allocation2 + $0x30] sm:$0xff] %v385_v44  ;;  %p415_p11 = por %p414_p10, %p413_p9 }
  0xfb   :  { %p416_p12 = pnand %p415_p11, %p409_p8 }
  0xfd   :  { %419 = shalt.err (!%p416_p12)
}
  0xfe   :  { %s420_s29 = scalar_lea.hbm %s554_s2, 1024 }
  0xff   :  { %p421_p13 = scmp.ne.s32.totalorder %s554_s2, %s420_s29  ;;  %p424_p0 = scmp.lt.u32.totalorder %s420_s29, %s554_s2 }
 0x101   :  { %p426_p1 = pnand %p424_p0, %p421_p13 }
 0x103   :  { %429 = shalt.err (!%p426_p1)
}
 0x104   :  { %283 = dma.vmem_to_hbm [thread:$0]  %s278_s26, 1024, %s554_s2, [#allocation3], %s436_s21, %s436_s21, %s437_s22  }
 0x105   :  { %430 = dma.done.wait [#allocation3], 1024  }
 0x106   :  { %431 = vsyncadd [#allocation3], 4294966272 }
 0x107   :  { %432 = dma.done.wait [#allocation5], 256  }
 0x108   :  { %433 = vsyncadd [#allocation5], 4294967040 }
 0x109   :  { %302 = vsyncpa [#allocation3], 1 }
 0x10a   :  { %303 = vsyncpa [#allocation5], 1 }

</bundles_post_ra>
